<compile_context>
chip_gen: v7x
topology: tpu7x:2x2x1
jax: 0.10.0
libtpu: 0.0.40
codegen_flags: <defaults>
</compile_context>

<pallas_src>
import functools

import jax
import jax.numpy as jnp
from jax.experimental import pallas as pl
from jax.experimental.pallas import tpu as pltpu


def _embedder_kernel(y_ref, w1_ref, b1_ref, w2_ref, b2_ref, out_ref):
    """out = relu(y @ W1 + b1) @ W2 + b2 on one (row-packed) batch tile."""
    h = jnp.dot(y_ref[...], w1_ref[...], preferred_element_type=jnp.float32)
    h = jnp.maximum(h + b1_ref[...], 0.0)
    out = jnp.dot(h, w2_ref[...], preferred_element_type=jnp.float32)
    out_ref[...] = (out + b2_ref[...]).astype(out_ref.dtype)


def _block_diag(w, p):
    """(in, out) -> (p*in, p*out) block-diagonal with p copies of w (tiny, one-off)."""
    if p == 1:
        return w
    in_d, out_d = w.shape
    eye = jnp.eye(p, dtype=w.dtype)
    # block[a*in + i, b*out + o] = eye[a, b] * w[i, o]
    return jnp.einsum("pq,io->piqo", eye, w).reshape(p * in_d, p * out_d)


def _round_up(x, m):
    return ((x + m - 1) // m) * m


@functools.partial(jax.jit, static_argnames=("tm", "single_block_rows"))
def embedder_forward(y, w1, b1, w2, b2, *, tm=8192, single_block_rows=16384):
    """y: [B, num_classes] f32 -> [B, latent_dim] f32 == relu(y@W1+b1)@W2+b2.

    tm:                batch-tile (rows of y) for the gridded path.
    single_block_rows: largest batch handled as one un-gridded block.
    """
    B, C = y.shape
    H = w1.shape[1]
    L = w2.shape[1]
    out_dtype = y.dtype

    # Row-pack factor: fold 8 batch rows into the lane dimension so every block
    # is lane-dense (C=10 -> 80, H=32 -> 256, L=16 -> 128 lanes). Falls back to
    # the plain layout when B is not a multiple of 8.
    P = 8 if B % 8 == 0 else 1
    Bp = B // P

    # One-off tiny weight prep (~100 KiB total for the default dims; fused under jit).
    f32 = jnp.float32
    w1_b = _block_diag(w1.astype(f32), P)
    w2_b = _block_diag(w2.astype(f32), P)
    b1_b = jnp.tile(b1.astype(f32), P).reshape(1, P * H)
    b2_b = jnp.tile(b2.astype(f32), P).reshape(1, P * L)

    y_p = y.reshape(Bp, P * C)  # free: identical row-major bytes

    if B <= single_block_rows:
        # Small/medium batch: one un-gridded call, all operands resident in VMEM.
        out_p = pl.pallas_call(
            _embedder_kernel,
            out_shape=jax.ShapeDtypeStruct((Bp, P * L), out_dtype),
        )(y_p, w1_b, b1_b, w2_b, b2_b)
        return out_p.reshape(B, L)

    # Large batch: tile the (packed) batch axis. Weights/biases have constant
    # index maps (fetched once, stay resident); activation/output tiles are
    # double-buffered. Ragged last block is masked by Pallas — no pad/slice
    # HBM passes around the kernel.
    tm_p = max(8, (tm // P) // 8 * 8)       # packed rows per tile, multiple of 8
    tm_p = min(tm_p, _round_up(Bp, 8))      # don't over-allocate for smallish B
    grid = (pl.cdiv(Bp, tm_p),)

    out_p = pl.pallas_call(
        _embedder_kernel,
        out_shape=jax.ShapeDtypeStruct((Bp, P * L), out_dtype),
        grid=grid,
        in_specs=[
            pl.BlockSpec((tm_p, P * C), lambda i: (i, 0)),   # activations (tiled)
            pl.BlockSpec((P * C, P * H), lambda i: (0, 0)),  # W1 (resident)
            pl.BlockSpec((1, P * H), lambda i: (0, 0)),      # b1 (resident)
            pl.BlockSpec((P * H, P * L), lambda i: (0, 0)),  # W2 (resident)
            pl.BlockSpec((1, P * L), lambda i: (0, 0)),      # b2 (resident)
        ],
        out_specs=pl.BlockSpec((tm_p, P * L), lambda i: (i, 0)),
        compiler_params=pltpu.CompilerParams(
            # Batch tiles are independent; lets megacore parts shard the axis.
            # TODO(synk): on v7x an explicit CORE_PARALLEL / core_map split could
            # further halve per-TC grid steps while the kernel is overhead-bound.
            dimension_semantics=("parallel",),
        ),
    )(y_p, w1_b, b1_b, w2_b, b2_b)

    return out_p.reshape(B, L)


def init_params(key, num_classes, latent_dim, hidden_dim):
    """Deterministic init matching torch.nn.Linear's default uniform scheme."""
    k1, k2, k3, k4 = jax.random.split(key, 4)
    lim1 = 1.0 / jnp.sqrt(num_classes)
    lim2 = 1.0 / jnp.sqrt(hidden_dim)
    # Stored as (in_features, out_features): equivalent to torch weight.T
    w1 = jax.random.uniform(k1, (num_classes, hidden_dim), jnp.float32, -lim1, lim1)
    b1 = jax.random.uniform(k2, (hidden_dim,), jnp.float32, -lim1, lim1)
    w2 = jax.random.uniform(k3, (hidden_dim, latent_dim), jnp.float32, -lim2, lim2)
    b2 = jax.random.uniform(k4, (latent_dim,), jnp.float32, -lim2, lim2)
    return w1, b1, w2, b2


if __name__ == "__main__":
    num_classes, latent_dim, hidden_dim = 10, 16, 32

    key = jax.random.PRNGKey(0)
    kp, k1, k2, k3 = jax.random.split(key, 4)
    w1, b1, w2, b2 = init_params(kp, num_classes, latent_dim, hidden_dim)

    def reference(y):
        return jnp.maximum(y @ w1 + b1, 0.0) @ w2 + b2

    # 1) Small batch -> packed (P=8), single un-gridded block.
    y_small = jax.random.normal(k1, (8, num_classes), jnp.float32)
    out = jax.block_until_ready(embedder_forward(y_small, w1, b1, w2, b2))
    assert out.shape == (8, latent_dim)
    assert jnp.allclose(out, reference(y_small), atol=5e-5, rtol=5e-5)

    # 2) Batch not a multiple of 8 -> unpacked (P=1) fallback, still un-gridded.
    y_odd = jax.random.normal(k2, (7, num_classes), jnp.float32)
    out = jax.block_until_ready(embedder_forward(y_odd, w1, b1, w2, b2))
    assert out.shape == (7, latent_dim)
    assert jnp.allclose(out, reference(y_odd), atol=5e-5, rtol=5e-5)

    # 3) Large batch -> gridded path (tm=8192 rows == 1024 packed rows/step),
    #    grid = cdiv(4097, 1024) = 5 with a ragged, Pallas-masked last block.
    y_big = jax.random.normal(k3, (32776, num_classes), jnp.float32)
    out = jax.block_until_ready(embedder_forward(y_big, w1, b1, w2, b2))
    assert out.shape == (32776, latent_dim)
    assert jnp.allclose(out, reference(y_big), atol=5e-5, rtol=5e-5)

    print("KERNEL_OK")
</pallas_src>

<mosaic_0001>
module attributes {stable_mosaic.version = 11 : i64} {
  func.func @_embedder_kernel(%arg0: memref<1x80xf32, #tpu.memory_space<vmem>>, %arg1: memref<80x256xf32, #tpu.memory_space<vmem>>, %arg2: memref<1x256xf32, #tpu.memory_space<vmem>>, %arg3: memref<256x128xf32, #tpu.memory_space<vmem>>, %arg4: memref<1x128xf32, #tpu.memory_space<vmem>>, %arg5: memref<1x128xf32, #tpu.memory_space<vmem>>) attributes {dimension_semantics = [], scalar_prefetch = 0 : i64, scratch_operands = 0 : i64, tpu.core_type = #tpu.core_type<tc>} {
    %c0 = arith.constant 0 : index
    %c0_0 = arith.constant 0 : index
    %0 = vector.load %arg0[%c0, %c0_0] : memref<1x80xf32, #tpu.memory_space<vmem>>, vector<1x80xf32>
    %c0_1 = arith.constant 0 : index
    %c0_2 = arith.constant 0 : index
    %1 = vector.load %arg1[%c0_1, %c0_2] : memref<80x256xf32, #tpu.memory_space<vmem>>, vector<80x256xf32>
    %cst = arith.constant dense<0.000000e+00> : vector<1x256xf32>
    %2 = tpu.matmul %0, %1, %cst {dimension_numbers = #tpu.dot_dimension_numbers<[1], [0], [0], [1], [0, 0, 1, 1], [], []>} : vector<1x80xf32>, vector<80x256xf32>, vector<1x256xf32> -> vector<1x256xf32>
    %c0_3 = arith.constant 0 : index
    %c0_4 = arith.constant 0 : index
    %3 = vector.load %arg2[%c0_3, %c0_4] : memref<1x256xf32, #tpu.memory_space<vmem>>, vector<1x256xf32>
    %4 = arith.addf %2, %3 : vector<1x256xf32>
    %cst_5 = arith.constant 0.000000e+00 : f32
    %5 = vector.broadcast %cst_5 : f32 to vector<1x256xf32>
    %6 = arith.maximumf %4, %5 : vector<1x256xf32>
    %c0_6 = arith.constant 0 : index
    %c0_7 = arith.constant 0 : index
    %7 = vector.load %arg3[%c0_6, %c0_7] : memref<256x128xf32, #tpu.memory_space<vmem>>, vector<256x128xf32>
    %cst_8 = arith.constant dense<0.000000e+00> : vector<1x128xf32>
    %8 = tpu.matmul %6, %7, %cst_8 {dimension_numbers = #tpu.dot_dimension_numbers<[1], [0], [0], [1], [0, 0, 1, 1], [], []>} : vector<1x256xf32>, vector<256x128xf32>, vector<1x128xf32> -> vector<1x128xf32>
    %c0_9 = arith.constant 0 : index
    %c0_10 = arith.constant 0 : index
    %9 = vector.load %arg4[%c0_9, %c0_10] : memref<1x128xf32, #tpu.memory_space<vmem>>, vector<1x128xf32>
    %10 = arith.addf %8, %9 : vector<1x128xf32>
    %c0_11 = arith.constant 0 : index
    %c0_12 = arith.constant 0 : index
    %11 = vector.load %arg5[%c0_11, %c0_12] : memref<1x128xf32, #tpu.memory_space<vmem>>, vector<1x128xf32>
    tpu.vector_store %arg5[%c0_11, %c0_12], %10 {strides = array<i32>} : memref<1x128xf32, #tpu.memory_space<vmem>>, vector<1x128xf32>,
    return
  }
}

</mosaic_0001>

<bundles_post_ra>
// kernel: tile.13
= control target key start
LH: loop header
LB: loop body
LE: loop exit
PB: predicated region body
PF: predicated region fallthrough
CT: control target
= control target key end

     0   :  { %s22_s0 = inlined_call_operand.vmem [shape: f32[32], index: 0, kind: input, shape index: {}]   ;;  %s23_s1 = inlined_call_operand.vmem [shape: f32[8,32], index: 1, kind: output, shape index: {}]  }
   0x1   :  { %v4_v0 = vld [vmem:[%s22_s0] ss:$0 sm:$0xff] }
   0x2   :  { %5 = vst [vmem:[%s23_s1] sm:$0xff] %v4_v0 }

// kernel: tile.14
= control target key start
LH: loop header
LB: loop body
LE: loop exit
PB: predicated region body
PF: predicated region fallthrough
CT: control target
= control target key end

     0   :  { %s7_s6 = smov 3  ;;  %s14_s9 = smov 3  ;;  %vm4_vm0 = vcmask 261120   ;;  %vm11_vm1 = vcmask 1048320   ;;  %vm18_vm2 = vcmask 785920   ;;  %vm25_vm3 = vcmask 523520   ;;  %s76_s0 = inlined_call_operand.vmem [shape: f32[8,32], index: 0, kind: input, shape index: {}]   ;;  %s77_s1 = inlined_call_operand.vmem [shape: f32[1,256], index: 1, kind: output, shape index: {}]  }
   0x1   :  { %v38_v0 = vld [vmem:[%s76_s0 + $0x3] ss:$4 sm:%s7_s6]   ;;  %s45_s10 = smov 96   ;;  %s21_s11 = smov 3  ;;  %v39_v1 = vld [vmem:[%s76_s0 + $0x2] ss:$4 sm:%s14_s9]  }
   0x2   :  { %9 = vrot.lane.b32.xlu0 %v38_v0, %s45_s10  ;;  %v40_v2 = vld [vmem:[%s76_s0 + $0x1] ss:$4 sm:%s21_s11]   ;;  %s2_s16 = smov 3  ;;  %s46_s17 = smov 32  }
   0x3   :  { %23 = vrot.lane.b32.xlu1 %v40_v2, %s46_s17  ;;  %v3_v3 = vld [vmem:[%s76_s0] ss:$4 sm:%s2_s16]   ;;  %s47_s0 = smov 64  }
   0x4   :  { %5 = vst.msk [vmem:[#allocation0] ss:$8 sm:$0x3] %vm4_vm0, %v3_v3  }
   0x6   :  { %16 = vrot.lane.b32.xlu0 %v39_v1, %s47_s0 }
  0x74   :  { %v10_v4 = vpop.permute.xlu0 %9  }
  0x75   :  { %12 = vst.msk [vmem:[#allocation0] ss:$8 sm:$0x3] %vm11_vm1, %v10_v4   ;;  %v24_v5 = vpop.permute.xlu1 %23  }
  0x78   :  { %v17_v6 = vpop.permute.xlu0 %16  }
  0x79   :  { %19 = vst.msk [vmem:[#allocation0] ss:$8 sm:$0x3] %vm18_vm2, %v17_v6  }
  0x7a   :  { %26 = vst.msk [vmem:[#allocation0] ss:$8 sm:$0x3] %vm25_vm3, %v24_v5  }
  0x81   :  { %v30_v7 = vld [vmem:[#allocation0] sm:$0x1]  ;;  %v34_v8 = vld [vmem:[#allocation0 + $0x8] sm:$0x1] }
  0x82   :  { %32 = vst [vmem:[%s77_s1] sm:$0x1] %v30_v7  ;;  %41 = vst [vmem:[%s77_s1 + $0x1] sm:$0x1] %v34_v8 }

// kernel: tile.18
= control target key start
LH: loop header
LB: loop body
LE: loop exit
PB: predicated region body
PF: predicated region fallthrough
CT: control target
= control target key end

     0   :  { %s22_s0 = inlined_call_operand.vmem [shape: f32[16], index: 0, kind: input, shape index: {}]   ;;  %s23_s1 = inlined_call_operand.vmem [shape: f32[8,16], index: 1, kind: output, shape index: {}]  }
   0x1   :  { %v4_v0 = vld [vmem:[%s22_s0] ss:$0 sm:$0xff] }
   0x2   :  { %5 = vst [vmem:[%s23_s1] sm:$0xff] %v4_v0 }

// kernel: tile.19
= control target key start
LH: loop header
LB: loop body
LE: loop exit
PB: predicated region body
PF: predicated region fallthrough
CT: control target
= control target key end

     0   :  { %s67_s10 = smov 112   ;;  %s68_s11 = smov 80   ;;  %vm3_vm0 = vcmask 130048   ;;  %vm9_vm1 = vcmask 1048448   ;;  %vm15_vm2 = vcmask 917248   ;;  %vm21_vm3 = vcmask 786048   ;;  %s111_s0 = inlined_call_operand.vmem [shape: f32[8,16], index: 0, kind: input, shape index: {}]   ;;  %s112_s1 = inlined_call_operand.vmem [shape: f32[1,128], index: 1, kind: output, shape index: {}]  }
   0x1   :  { %v53_v0 = vld [vmem:[%s111_s0 + $0x7] sm:$0x1]   ;;  %v55_v1 = vld [vmem:[%s111_s0 + $0x5] sm:$0x1]   ;;  %v54_v2 = vld [vmem:[%s111_s0 + $0x6] sm:$0x1]  }
   0x2   :  { %7 = vrot.lane.b32.xlu0 %v53_v0, %s67_s10  ;;  %19 = vrot.lane.b32.xlu1 %v55_v1, %s68_s11  ;;  %v56_v3 = vld [vmem:[%s111_s0 + $0x4] sm:$0x1]   ;;  %v2_v4 = vld [vmem:[%s111_s0] sm:$0x1]   ;;  %s69_s18 = smov 96   ;;  %s70_s19 = smov 64  }
   0x3   :  { %4 = vst.msk [vmem:[#allocation0] sm:$0x1] %vm3_vm0, %v2_v4   ;;  %v57_v5 = vld [vmem:[%s111_s0 + $0x3] sm:$0x1]   ;;  %v58_v6 = vld [vmem:[%s111_s0 + $0x2] sm:$0x1]  }
   0x4   :  { %s71_s24 = smov 48   ;;  %s72_s25 = smov 32   ;;  %v59_v7 = vld [vmem:[%s111_s0 + $0x1] sm:$0x1]   ;;  %vm27_vm4 = vcmask 654848   ;;  %vm33_vm5 = vcmask 523648  }
   0x5   :  { %s73_s0 = smov 16   ;;  %vm39_vm6 = vcmask 392448   ;;  %vm45_vm7 = vcmask 261248  }
   0x6   :  { %13 = vrot.lane.b32.xlu0 %v54_v2, %s69_s18  ;;  %25 = vrot.lane.b32.xlu1 %v56_v3, %s70_s19 }
   0xa   :  { %31 = vrot.lane.b32.xlu0 %v57_v5, %s71_s24  ;;  %37 = vrot.lane.b32.xlu1 %v58_v6, %s72_s25 }
   0xe   :  { %43 = vrot.lane.b32.xlu0 %v59_v7, %s73_s0 }
  0x74   :  { %v8_v8 = vpop.permute.xlu0 %7   ;;  %v20_v9 = vpop.permute.xlu1 %19  }
  0x75   :  { %10 = vst.msk [vmem:[#allocation0] sm:$0x1] %vm9_vm1, %v8_v8  }
  0x78   :  { %v14_v10 = vpop.permute.xlu0 %13   ;;  %v26_v11 = vpop.permute.xlu1 %25  }
  0x79   :  { %16 = vst.msk [vmem:[#allocation0] sm:$0x1] %vm15_vm2, %v14_v10  }
  0x7a   :  { %22 = vst.msk [vmem:[#allocation0] sm:$0x1] %vm21_vm3, %v20_v9  }
  0x7b   :  { %28 = vst.msk [vmem:[#allocation0] sm:$0x1] %vm27_vm4, %v26_v11  }
  0x7c   :  { %v32_v12 = vpop.permute.xlu0 %31   ;;  %v38_v13 = vpop.permute.xlu1 %37  }
  0x7d   :  { %34 = vst.msk [vmem:[#allocation0] sm:$0x1] %vm33_vm5, %v32_v12  }
  0x7e   :  { %40 = vst.msk [vmem:[#allocation0] sm:$0x1] %vm39_vm6, %v38_v13  }
  0x80   :  { %v44_v14 = vpop.permute.xlu0 %43  }
  0x81   :  { %46 = vst.msk [vmem:[#allocation0] sm:$0x1] %vm45_vm7, %v44_v14  }
  0x88   :  { %v50_v15 = vld [vmem:[#allocation0] sm:$0x1] }
  0x89   :  { %52 = vst [vmem:[%s112_s1] sm:$0x1] %v50_v15 }

// kernel: embedder_forward.1
= control target key start
LH: loop header
LB: loop body
LE: loop exit
PB: predicated region body
PF: predicated region fallthrough
CT: control target
= control target key end

     0   :  { %v327_v3 = vmov 0.0   ;;  %vm53_vm0 = vcmask 654336   ;;  %s526_s1 = inlined_call_operand.vmem [shape: f32[80,256], index: 1, kind: input, shape index: {}]   ;;  %s527_s3 = inlined_call_operand.vmem [shape: f32[256,128], index: 3, kind: input, shape index: {}]   ;;  %s528_s0 = inlined_call_operand.vmem [shape: f32[1,80], index: 0, kind: input, shape index: {}]   ;;  %s529_s2 = inlined_call_operand.vmem [shape: f32[1,256], index: 2, kind: input, shape index: {}]   ;;  %s530_s4 = inlined_call_operand.vmem [shape: f32[1,128], index: 4, kind: input, shape index: {}]   ;;  %s531_s5 = inlined_call_operand.vmem [shape: f32[1,128], index: 5, kind: output, shape index: {}]  }
   0x1   :  { %v22_v0 = vld [vmem:[%s526_s1 + $0x8] sm:$0xff]  ;;  %v24_v1 = vld [vmem:[%s526_s1 + $0x18] sm:$0xff]  ;;  %v21_v2 = vld [vmem:[%s526_s1] sm:$0xff]  ;;  %121 = vmatprep.mubr.f32.mxu0 %v327_v3 }
   0x2   :  { %v274_v4 = vpack.c.bf16 %v24_v1, %v22_v0  ;;  %v23_v5 = vld [vmem:[%s526_s1 + $0x10] sm:$0xff]  ;;  %v26_v6 = vld [vmem:[%s526_s1 + $0x28] sm:$0xff]  ;;  %v28_v7 = vld [vmem:[%s526_s1 + $0x38] sm:$0xff] }
   0x3   :  { %v276_v8 = vpack.c.bf16 %v23_v5, %v21_v2  ;;  %v278_v9 = vpack.c.bf16 %v28_v7, %v26_v6  ;;  %v25_v10 = vld [vmem:[%s526_s1 + $0x20] sm:$0xff]  ;;  %v27_v11 = vld [vmem:[%s526_s1 + $0x30] sm:$0xff]  ;;  %v30_v12 = vld [vmem:[%s526_s1 + $0x48] sm:$0xff] }
   0x4   :  { %275 = vmatprep.subr.bf16.mxu0 %v274_v4  ;;  %v32_v13 = vld [vmem:[%s526_s1 + $0x58] sm:$0xff]  ;;  %v280_v14 = vpack.c.bf16 %v27_v11, %v25_v10  ;;  %v29_v16 = vld [vmem:[%s526_s1 + $0x40] sm:$0xff]  ;;  %v31_v17 = vld [vmem:[%s526_s1 + $0x50] sm:$0xff] }
   0x5   :  { %277 = vmatpush1.bf16.msra.mxu0 %v276_v8  ;;  %v282_v15 = vpack.c.bf16 %v32_v13, %v30_v12  ;;  %v34_v18 = vld [vmem:[%s526_s1 + $0x68] sm:$0xff]  ;;  %v36_v19 = vld [vmem:[%s526_s1 + $0x78] sm:$0xff]  ;;  %v33_v20 = vld [vmem:[%s526_s1 + $0x60] sm:$0xff]  ;;  %v284_v25 = vpack.c.bf16 %v31_v17, %v29_v16  ;;  %v43_v16 = vlaneseq }
   0x6   :  { %279 = vmatprep.subr.bf16.mxu0 %v278_v9  ;;  %v35_v21 = vld [vmem:[%s526_s1 + $0x70] sm:$0xff]  ;;  %v146_v22 = vld [vmem:[%s527_s3 + $0x80] sm:$0xff]  ;;  %v147_v23 = vld [vmem:[%s527_s3 + $0x88] sm:$0xff]  ;;  %v286_v30 = vpack.c.bf16 %v36_v19, %v34_v18 }
   0x7   :  { %v130_v24 = vld [vmem:[%s527_s3] sm:$0xff]  ;;  %v294_v26 = vpack.c.bf16 %v147_v23, %v146_v22  ;;  %v131_v27 = vld [vmem:[%s527_s3 + $0x8] sm:$0xff]  ;;  %v148_v28 = vld [vmem:[%s527_s3 + $0x90] sm:$0xff]  ;;  %v288_v40 = vpack.c.bf16 %v35_v21, %v33_v20  ;;  %v44_v17 = vshrl.u32 %v43_v16, 7 }
   0x8   :  { %v149_v29 = vld [vmem:[%s527_s3 + $0x98] sm:$0xff]  ;;  %v296_v31 = vpack.c.bf16 %v131_v27, %v130_v24  ;;  %v132_v33 = vld [vmem:[%s527_s3 + $0x10] sm:$0xff]  ;;  %v150_v35 = vld [vmem:[%s527_s3 + $0xa0] sm:$0xff] }
   0x9   :  { %281 = vmatpush1.bf16.msra.mxu0 %v280_v14  ;;  %v298_v32 = vpack.c.bf16 %v149_v29, %v148_v28  ;;  %v133_v34 = vld [vmem:[%s527_s3 + $0x18] sm:$0xff]  ;;  %v38_v36 = vld [vmem:[%s526_s1 + $0x88] sm:$0xff]  ;;  %295 = vmatprep.subr.bf16.mxu1 %v294_v26  ;;  %v37_v41 = vld [vmem:[%s526_s1 + $0x80] sm:$0xff]  ;;  %v45_v18 = vsub.s32 0, %v44_v17  ;;  %v49_v20 = vsub.s32 1, %v44_v17 }
   0xa   :  { %283 = vmatprep.subr.bf16.mxu0 %v282_v15  ;;  %v40_v37 = vld [vmem:[%s526_s1 + $0x98] sm:$0xff]  ;;  %v151_v38 = vld [vmem:[%s527_s3 + $0xa8] sm:$0xff]  ;;  %297 = vmatpush3.bf16.msra.mxu1 %v296_v31  ;;  %v300_v39 = vpack.c.bf16 %v133_v34, %v132_v33  ;;  %v134_v43 = vld [vmem:[%s527_s3 + $0x20] sm:$0xff] }
   0xb   :  { %299 = vmatprep.subr.bf16.mxu1 %v298_v32  ;;  %v302_v42 = vpack.c.bf16 %v151_v38, %v150_v35  ;;  %v135_v44 = vld [vmem:[%s527_s3 + $0x28] sm:$0xff]  ;;  %v290_v45 = vpack.c.bf16 %v40_v37, %v38_v36  ;;  %v39_v46 = vld [vmem:[%s526_s1 + $0x90] sm:$0xff]  ;;  %v153_v48 = vld [vmem:[%s527_s3 + $0xb8] sm:$0xff] }
   0xc   :  { %v152_v47 = vld [vmem:[%s527_s3 + $0xb0] sm:$0xff]  ;;  %v304_v49 = vpack.c.bf16 %v135_v44, %v134_v43  ;;  %v292_v50 = vpack.c.bf16 %v39_v46, %v37_v41  ;;  %v137_v53 = vld [vmem:[%s527_s3 + $0x38] sm:$0xff]  ;;  %v154_v54 = vld [vmem:[%s527_s3 + $0xc0] sm:$0xff] }
   0xd   :  { %285 = vmatpush1.bf16.msra.mxu0 %v284_v25  ;;  %v306_v51 = vpack.c.bf16 %v153_v48, %v152_v47  ;;  %v136_v52 = vld [vmem:[%s527_s3 + $0x30] sm:$0xff]  ;;  %v155_v55 = vld [vmem:[%s527_s3 + $0xc8] sm:$0xff]  ;;  %v20_v57 = vld [vmem:[%s528_s0] sm:$0x1] }
   0xe   :  { %287 = vmatprep.subr.bf16.mxu0 %v286_v30  ;;  %301 = vmatpush3.bf16.msra.mxu1 %v300_v39  ;;  %v308_v56 = vpack.c.bf16 %v137_v53, %v136_v52  ;;  %v310_v58 = vpack.c.bf16 %v155_v55, %v154_v54  ;;  %v138_v59 = vld [vmem:[%s527_s3 + $0x40] sm:$0xff]  ;;  %v139_v60 = vld [vmem:[%s527_s3 + $0x48] sm:$0xff]  ;;  %v156_v61 = vld [vmem:[%s527_s3 + $0xd0] sm:$0xff] }
   0xf   :  { %303 = vmatprep.subr.bf16.mxu1 %v302_v42  ;;  %v157_v62 = vld [vmem:[%s527_s3 + $0xd8] sm:$0xff]  ;;  %v312_v63 = vpack.c.bf16 %v139_v60, %v138_v59  ;;  %v140_v1 = vld [vmem:[%s527_s3 + $0x50] sm:$0xff]  ;;  %v158_v3 = vld [vmem:[%s527_s3 + $0xe0] sm:$0xff] }
  0x10   :  { %v314_v0 = vpack.c.bf16 %v157_v62, %v156_v61  ;;  %v141_v2 = vld [vmem:[%s527_s3 + $0x58] sm:$0xff]  ;;  %v159_v4 = vld [vmem:[%s527_s3 + $0xe8] sm:$0xff]  ;;  %v142_v7 = vld [vmem:[%s527_s3 + $0x60] sm:$0xff] }
  0x11   :  { %289 = vmatpush1.bf16.msra.mxu0 %v288_v40  ;;  %v316_v5 = vpack.c.bf16 %v141_v2, %v140_v1  ;;  %v318_v6 = vpack.c.bf16 %v159_v4, %v158_v3  ;;  %v143_v8 = vld [vmem:[%s527_s3 + $0x68] sm:$0xff]  ;;  %v160_v10 = vld [vmem:[%s527_s3 + $0xf0] sm:$0xff]  ;;  %v161_v11 = vld [vmem:[%s527_s3 + $0xf8] sm:$0xff] }
  0x12   :  { %291 = vmatprep.subr.bf16.mxu0 %v290_v45  ;;  %305 = vmatpush3.bf16.msra.mxu1 %v304_v49  ;;  %v320_v9 = vpack.c.bf16 %v143_v8, %v142_v7  ;;  %v322_v12 = vpack.c.bf16 %v161_v11, %v160_v10  ;;  %v144_v13 = vld [vmem:[%s527_s3 + $0x70] sm:$0xff]  ;;  %v145_v14 = vld [vmem:[%s527_s3 + $0x78] sm:$0xff]  ;;  %v41_v19 = vld [vmem:[%s529_s2] sm:$0x3] }
  0x13   :  { %307 = vmatprep.subr.bf16.mxu1 %v306_v51  ;;  %v324_v15 = vpack.c.bf16 %v145_v14, %v144_v13  ;;  %v46_v21 = vrot.slane %v41_v19, %v45_v18  ;;  %v50_v22 = vrot.slane %v41_v19, %v49_v20  ;;  %v162_v30 = vld [vmem:[%s530_s4] sm:$0x1] }
  0x15   :  { %293 = vmatpush1.bf16.msra.mxu0 %v292_v50 }
  0x16   :  { %309 = vmatpush3.bf16.msra.mxu1 %v308_v56 }
  0x17   :  { %311 = vmatprep.subr.bf16.mxu1 %v310_v58 }
  0x18   :  { %238 = vmatmul.mubr.msk.f32.vlgmr.msra.gmra.mrb[0].mxu0 %vm53_vm0, %v20_v57 }
  0x1a   :  { %313 = vmatpush3.bf16.msra.mxu1 %v312_v63 }
  0x1b   :  { %315 = vmatprep.subr.bf16.mxu1 %v314_v0 }
  0x1e   :  { %317 = vmatpush3.bf16.msra.mxu1 %v316_v5 }
  0x1f   :  { %319 = vmatprep.subr.bf16.mxu1 %v318_v6 }
  0x22   :  { %321 = vmatpush3.bf16.msra.mxu1 %v320_v9 }
  0x23   :  { %323 = vmatprep.subr.bf16.mxu1 %v322_v12 }
  0x26   :  { %325 = vmatpush3.bf16.msra.mxu1 %v324_v15 }
  0xeb   :  { %v123_v23 = vpop.f32.mrb[0].mxu0 }
  0xec   :  { %v124_v24 = vadd.f32 %v123_v23, %v46_v21  ;;  %v125_v25 = vpop.f32.mrb[1].mxu0 }
  0xed   :  { %v126_v26 = vadd.f32 %v125_v25, %v50_v22 }
  0xee   :  { %v128_v28 = vmax.f32 %v124_v24, 0.0 }
  0xef   :  { %v129_v27 = vmax.f32 %v126_v26, 0.0 }
  0xf1   :  { %227 = vmatprep.mubr.f32.mxu1 %v129_v27 }
  0xf2   :  { %228 = vmatmul.mubr.f32.vlgmr.msra.gmra.mrb[0].mxu1 %v128_v28 }
 0x1c5   :  { %v271_v29 = vpop.f32.mrb[0].mxu1 }
 0x1c6   :  { %v272_v31 = vpop.f32.mrb[1].mxu1 }
 0x1c7   :  { %v273_v32 = vadd.f32 %v272_v31, %v271_v29 }
 0x1c9   :  { %v230_v33 = vadd.f32 %v273_v32, %v162_v30 }
 0x1cb   :  { %233 = vst [vmem:[%s531_s5] sm:$0x1] %v230_v33 }

</bundles_post_ra>
